<compile_context>
chip_gen: v7x
topology: tpu7x:2x2x1
jax: 0.10.0
libtpu: 0.0.40
codegen_flags: <defaults>
</compile_context>

<pallas_src>
import functools

import jax
import jax.numpy as jnp
from jax.experimental import pallas as pl
from jax.experimental.pallas import tpu as pltpu


def _round_up(x, m):
    return (x + m - 1) // m * m


# --------------------------------------------------------------------------
# Tiled matmul (nn.Linear, bias=False) — used for o_proj
# --------------------------------------------------------------------------
def matmul_kernel(x_ref, w_ref, o_ref, acc_ref):
    @pl.when(pl.program_id(2) == 0)
    def _():
        acc_ref[...] = jnp.zeros_like(acc_ref)

    acc_ref[...] += jnp.dot(x_ref[...], w_ref[...],
                            preferred_element_type=jnp.float32)

    @pl.when(pl.program_id(2) == pl.num_programs(2) - 1)
    def _():
        o_ref[...] = acc_ref[...].astype(o_ref.dtype)


def linear(x, w, *, tm=512, tn=512, tk=512):
    """x: (M, K), w: (K, N) — tiled matmul with fp32 accumulation.

    Note: at real model sizes pick tn/tk dividing N/K (or pre-pad the weight once
    at init) so the jnp.pad below is a no-op every forward.
    """
    M, K = x.shape
    N = w.shape[1]
    tm = min(tm, _round_up(M, 8))
    tn = min(tn, _round_up(N, 128))
    tk = min(tk, _round_up(K, 128))
    Mp, Kp, Np = _round_up(M, tm), _round_up(K, tk), _round_up(N, tn)
    xp = x if (Mp == M and Kp == K) else jnp.pad(x, ((0, Mp - M), (0, Kp - K)))
    wp = w if (Kp == K and Np == N) else jnp.pad(w, ((0, Kp - K), (0, Np - N)))

    out = pl.pallas_call(
        matmul_kernel,
        out_shape=jax.ShapeDtypeStruct((Mp, Np), x.dtype),
        grid_spec=pltpu.PrefetchScalarGridSpec(
            num_scalar_prefetch=0,
            grid=(Mp // tm, Np // tn, Kp // tk),
            in_specs=[
                pl.BlockSpec((tm, tk), lambda i, j, k: (i, k)),
                pl.BlockSpec((tk, tn), lambda i, j, k: (k, j)),
            ],
            out_specs=pl.BlockSpec((tm, tn), lambda i, j, k: (i, j)),
            scratch_shapes=[pltpu.VMEM((tm, tn), jnp.float32)],
        ),
        compiler_params=pltpu.CompilerParams(
            dimension_semantics=("parallel", "parallel", "arbitrary")),
    )(xp, wp)
    return out[:M, :N] if (Mp != M or Np != N) else out


# --------------------------------------------------------------------------
# Fused low-rank projection chains (proj -> RMSNorm -> proj), VMEM resident
# --------------------------------------------------------------------------
def _rmsnorm(a, g, eps):
    af = a.astype(jnp.float32)
    var = jnp.mean(af * af, axis=-1, keepdims=True)
    return (af * jax.lax.rsqrt(var + eps)).astype(a.dtype) * g


def q_chain_kernel(x_ref, wa_ref, g_ref, wb_ref, o_ref, *, eps):
    # q = q_b_proj(q_a_layernorm(q_a_proj(x)))
    a = jnp.dot(x_ref[...], wa_ref[...],
                preferred_element_type=jnp.float32).astype(x_ref.dtype)
    a_n = _rmsnorm(a, g_ref[...], eps)
    o_ref[...] = jnp.dot(a_n.astype(wb_ref.dtype), wb_ref[...],
                         preferred_element_type=jnp.float32).astype(o_ref.dtype)


def kv_chain_kernel(x_ref, wc_ref, g_ref, wb_ref, wpe_ref, kv_ref, kpe_ref, *, eps):
    # compressed_kv = kv_a_proj[:, :kvr] ; k_pe = kv_a_proj[:, kvr:]
    # kv = kv_b_proj(kv_a_layernorm(compressed_kv))
    x = x_ref[...]
    ckv = jnp.dot(x, wc_ref[...],
                  preferred_element_type=jnp.float32).astype(x.dtype)
    ckv_n = _rmsnorm(ckv, g_ref[...], eps)
    kv_ref[...] = jnp.dot(ckv_n.astype(wb_ref.dtype), wb_ref[...],
                          preferred_element_type=jnp.float32).astype(kv_ref.dtype)
    kpe_ref[...] = jnp.dot(x, wpe_ref[...],
                           preferred_element_type=jnp.float32).astype(kpe_ref.dtype)


def fused_q_chain(x, w_a, g, w_b, *, eps=1e-6, tm=256):
    M, K = x.shape
    r, out = w_a.shape[1], w_b.shape[1]
    tm = min(tm, _round_up(M, 8))
    Mp = _round_up(M, tm)
    xp = x if Mp == M else jnp.pad(x, ((0, Mp - M), (0, 0)))
    y = pl.pallas_call(
        functools.partial(q_chain_kernel, eps=eps),
        out_shape=jax.ShapeDtypeStruct((Mp, out), x.dtype),
        grid_spec=pltpu.PrefetchScalarGridSpec(
            num_scalar_prefetch=0,
            grid=(Mp // tm,),
            in_specs=[
                pl.BlockSpec((tm, K), lambda i: (i, 0)),
                pl.BlockSpec((K, r), lambda i: (0, 0)),
                pl.BlockSpec((1, r), lambda i: (0, 0)),
                pl.BlockSpec((r, out), lambda i: (0, 0)),
            ],
            out_specs=pl.BlockSpec((tm, out), lambda i: (i, 0)),
        ),
        compiler_params=pltpu.CompilerParams(dimension_semantics=("parallel",)),
    )(xp, w_a, g.reshape(1, -1), w_b)
    return y[:M] if Mp != M else y


def fused_kv_chain(x, w_c, g, w_b, w_pe, *, eps=1e-6, tm=256):
    M, K = x.shape
    r, out, rope = w_c.shape[1], w_b.shape[1], w_pe.shape[1]
    tm = min(tm, _round_up(M, 8))
    Mp = _round_up(M, tm)
    xp = x if Mp == M else jnp.pad(x, ((0, Mp - M), (0, 0)))
    kv, kpe = pl.pallas_call(
        functools.partial(kv_chain_kernel, eps=eps),
        out_shape=(jax.ShapeDtypeStruct((Mp, out), x.dtype),
                   jax.ShapeDtypeStruct((Mp, rope), x.dtype)),
        grid_spec=pltpu.PrefetchScalarGridSpec(
            num_scalar_prefetch=0,
            grid=(Mp // tm,),
            in_specs=[
                pl.BlockSpec((tm, K), lambda i: (i, 0)),
                pl.BlockSpec((K, r), lambda i: (0, 0)),
                pl.BlockSpec((1, r), lambda i: (0, 0)),
                pl.BlockSpec((r, out), lambda i: (0, 0)),
                pl.BlockSpec((K, rope), lambda i: (0, 0)),
            ],
            out_specs=[
                pl.BlockSpec((tm, out), lambda i: (i, 0)),
                pl.BlockSpec((tm, rope), lambda i: (i, 0)),
            ],
        ),
        compiler_params=pltpu.CompilerParams(dimension_semantics=("parallel",)),
    )(xp, w_c, g.reshape(1, -1), w_b, w_pe)
    if Mp != M:
        kv, kpe = kv[:M], kpe[:M]
    return kv, kpe


# --------------------------------------------------------------------------
# Flash attention — all heads per grid step, online softmax, shared rope key,
# causal mask built only on the diagonal kv tile, causal kv-tile skipping.
# --------------------------------------------------------------------------
def flash_attn_kernel(qn_ref, qp_ref, kn_ref, kp_ref, v_ref, o_ref,
                      m_ref, l_ref, acc_ref, *, scale):
    qi = pl.program_id(1)
    kv = pl.program_id(2)

    @pl.when(kv == 0)
    def _init():
        m_ref[...] = jnp.full_like(m_ref, -jnp.inf)
        l_ref[...] = jnp.zeros_like(l_ref)
        acc_ref[...] = jnp.zeros_like(acc_ref)

    # kv tiles strictly above the diagonal block are fully masked — skip them.
    @pl.when(kv <= qi)
    def _compute():
        # Scale on the small (H, tq, D) query tiles, not the (H, tq, tkv) scores.
        qn = qn_ref[...] * scale            # (H, tq, nope)
        qp = qp_ref[...] * scale            # (H, tq, rope)
        kn = kn_ref[...]                    # (H, tkv, nope)
        kp = kp_ref[...]                    # (tkv, rope) — shared, never in HBM per head
        v = v_ref[...]                      # (H, tkv, dv)
        num_heads = kn.shape[0]

        s = jnp.einsum('hqd,hkd->hqk', qn, kn,
                       preferred_element_type=jnp.float32)
        kp_b = jnp.broadcast_to(kp[None, :, :], (num_heads,) + kp.shape)
        s = s + jnp.einsum('hqd,hkd->hqk', qp, kp_b,
                           preferred_element_type=jnp.float32)

        def update(scores):
            m_prev = m_ref[...]
            m_new = jnp.maximum(m_prev, jnp.max(scores, axis=-1, keepdims=True))
            alpha = jnp.exp(m_prev - m_new)
            p = jnp.exp(scores - m_new)
            l_ref[...] = alpha * l_ref[...] + jnp.sum(p, axis=-1, keepdims=True)
            acc_ref[...] = alpha * acc_ref[...] + jnp.einsum(
                'hqk,hkd->hqd', p.astype(v.dtype), v,
                preferred_element_type=jnp.float32)
            m_ref[...] = m_new

        @pl.when(kv < qi)                   # off-diagonal: fully unmasked, no mask work
        def _off_diag():
            update(s)

        @pl.when(kv == qi)                  # diagonal tile: local causal mask suffices
        def _diag():
            tq, tkv = s.shape[1], s.shape[2]
            row = jax.lax.broadcasted_iota(jnp.int32, (tq, tkv), 0)
            col = jax.lax.broadcasted_iota(jnp.int32, (tq, tkv), 1)
            update(jnp.where((row >= col)[None, :, :], s, -jnp.inf))

    # Finalize on the last grid iteration (scratch is untouched by skipped tiles).
    @pl.when(kv == pl.num_programs(2) - 1)
    def _finalize():
        inv_l = pl.reciprocal(l_ref[...], approx=True)      # (H, tq, 1)
        out = acc_ref[...] * inv_l                           # (H, tq, dv) fp32
        # Per-head static stores produce the (tq, H, dv) output block directly, so
        # the (B, S, H*dv) o_proj input is a free reshape (no XLA transpose pass).
        for h in range(out.shape[0]):
            o_ref[:, h, :] = out[h].astype(o_ref.dtype)


def flash_attention(q_nope, q_pe, k_nope, k_pe, v, scale, *, tile=128):
    """q_nope/q_pe/k_nope/v: (B, H, S, *); k_pe: (B, S, rope) shared across heads.
    Returns (B, S, H, dv) — heads already interleaved for a free reshape."""
    B, H, S, nope = q_nope.shape
    rope = q_pe.shape[-1]
    dv = v.shape[-1]

    t = _round_up(min(tile, S), 8)
    Sp = _round_up(S, t)
    if Sp != S:
        # Padded keys appear only in the diagonal tile of the last q tile, where
        # the in-kernel causal mask (col > row) already excludes them.
        pad4 = lambda a: jnp.pad(a, ((0, 0), (0, 0), (0, Sp - S), (0, 0)))
        q_nope, q_pe, k_nope, v = (pad4(a) for a in (q_nope, q_pe, k_nope, v))
        k_pe = jnp.pad(k_pe, ((0, 0), (0, Sp - S), (0, 0)))
    nq = nkv = Sp // t

    # kv index is clamped to the q tile so fully-masked kv tiles are never DMA'd.
    qn_spec = pl.BlockSpec((None, H, t, nope), lambda b, qi, kv: (b, 0, qi, 0))
    qp_spec = pl.BlockSpec((None, H, t, rope), lambda b, qi, kv: (b, 0, qi, 0))
    kn_spec = pl.BlockSpec((None, H, t, nope),
                           lambda b, qi, kv: (b, 0, jnp.minimum(kv, qi), 0))
    kp_spec = pl.BlockSpec((None, t, rope),
                           lambda b, qi, kv: (b, jnp.minimum(kv, qi), 0))
    v_spec = pl.BlockSpec((None, H, t, dv),
                          lambda b, qi, kv: (b, 0, jnp.minimum(kv, qi), 0))
    o_spec = pl.BlockSpec((None, t, H, dv), lambda b, qi, kv: (b, qi, 0, 0))

    out = pl.pallas_call(
        functools.partial(flash_attn_kernel, scale=scale),
        out_shape=jax.ShapeDtypeStruct((B, Sp, H, dv), q_nope.dtype),
        grid_spec=pltpu.PrefetchScalarGridSpec(
            num_scalar_prefetch=0,
            grid=(B, nq, nkv),
            in_specs=[qn_spec, qp_spec, kn_spec, kp_spec, v_spec],
            out_specs=o_spec,
            scratch_shapes=[
                pltpu.VMEM((H, t, 1), jnp.float32),   # m (running max)
                pltpu.VMEM((H, t, 1), jnp.float32),   # l (running denom)
                pltpu.VMEM((H, t, dv), jnp.float32),  # acc
            ],
        ),
        compiler_params=pltpu.CompilerParams(
            dimension_semantics=("parallel", "parallel", "arbitrary")),
    )(q_nope, q_pe, k_nope, k_pe, v)
    return out[:, :S] if Sp != S else out


# --------------------------------------------------------------------------
# RoPE glue (MiniCPMRotaryEmbedding, rope_scaling=None)
# --------------------------------------------------------------------------
def rope_cos_sin(seq_len, dim, base):
    inv_freq = 1.0 / (base ** (jnp.arange(0, dim, 2, dtype=jnp.float32) / dim))
    t = jnp.arange(seq_len, dtype=jnp.float32)
    freqs = jnp.outer(t, inv_freq)
    emb = jnp.concatenate([freqs, freqs], axis=-1)
    return jnp.cos(emb), jnp.sin(emb)


def rotate_half(x):
    d = x.shape[-1] // 2
    return jnp.concatenate([-x[..., d:], x[..., :d]], axis=-1)


def apply_rope(x, cos_p, sin_p):
    xf = x.astype(jnp.float32)
    return (xf * cos_p + rotate_half(xf) * sin_p).astype(x.dtype)


# --------------------------------------------------------------------------
# MiniCPMAttention forward (no KV cache, causal, output_attentions=False)
# --------------------------------------------------------------------------
def minicpm_attention_forward(params, hidden_states, position_ids, cfg):
    B, S, Hdim = hidden_states.shape
    H = cfg["num_heads"]
    nope = cfg["qk_nope_head_dim"]
    rope = cfg["qk_rope_head_dim"]
    dq = nope + rope
    dv = cfg["v_head_dim"]
    eps = 1e-6
    attn_tile = cfg.get("attn_block", 128)

    x2 = hidden_states.reshape(B * S, Hdim)

    # q = q_b_proj(q_a_layernorm(q_a_proj(x)))  — fused in one pallas_call
    q = fused_q_chain(x2, params["q_a_proj"], params["q_a_ln"],
                      params["q_b_proj"], eps=eps)
    q = q.reshape(B, S, H, dq).transpose(0, 2, 1, 3)                 # (B,H,S,dq)
    q_nope, q_pe = q[..., :nope], q[..., nope:]

    # compressed kv -> RMSNorm -> kv_b_proj (+ rope key) — fused in one pallas_call
    kv, k_pe = fused_kv_chain(x2, params["kv_a_proj_c"], params["kv_a_ln"],
                              params["kv_b_proj"], params["kv_a_proj_pe"], eps=eps)
    kv = kv.reshape(B, S, H, nope + dv).transpose(0, 2, 1, 3)        # (B,H,S,nope+dv)
    k_nope, value_states = kv[..., :nope], kv[..., nope:]
    k_pe = k_pe.reshape(B, S, rope)          # shared rope key — never replicated over H

    # rotary embedding (kv_seq_len == S: no cache)
    cos, sin = rope_cos_sin(S, rope, cfg["rope_theta"])
    cos_p = cos[position_ids]                # (B,S,rope)
    sin_p = sin[position_ids]
    q_pe = apply_rope(q_pe, cos_p[:, None], sin_p[:, None])
    k_pe = apply_rope(k_pe, cos_p, sin_p)

    scale = dq ** (-0.5)
    # TODO(synk): attention_dropout is identity at inference (p=0.0), so it is omitted.
    attn = flash_attention(q_nope, q_pe, k_nope, k_pe, value_states,
                           scale, tile=attn_tile)                    # (B,S,H,dv)

    # Heads are already interleaved along the last dims: free reshape, no transpose.
    out = linear(attn.reshape(B * S, H * dv), params["o_proj"]).reshape(B, S, Hdim)
    return out


# Pure-JAX reference (same math as the PyTorch module, no Pallas).
def reference_forward(params, hidden_states, attention_mask, position_ids, cfg):
    B, S, Hdim = hidden_states.shape
    H = cfg["num_heads"]
    nope, rope = cfg["qk_nope_head_dim"], cfg["qk_rope_head_dim"]
    dq, dv = nope + rope, cfg["v_head_dim"]
    eps = 1e-6

    def rms(x, w):
        xf = x.astype(jnp.float32)
        var = jnp.mean(xf * xf, axis=-1, keepdims=True)
        return (xf * jax.lax.rsqrt(var + eps)).astype(x.dtype) * w

    x2 = hidden_states.reshape(B * S, Hdim)
    q = rms(x2 @ params["q_a_proj"], params["q_a_ln"]) @ params["q_b_proj"]
    q = q.reshape(B, S, H, dq).transpose(0, 2, 1, 3)
    q_nope, q_pe = q[..., :nope], q[..., nope:]
    compressed_kv = x2 @ params["kv_a_proj_c"]
    k_pe = (x2 @ params["kv_a_proj_pe"]).reshape(B, S, 1, rope).transpose(0, 2, 1, 3)
    kv = rms(compressed_kv, params["kv_a_ln"]) @ params["kv_b_proj"]
    kv = kv.reshape(B, S, H, nope + dv).transpose(0, 2, 1, 3)
    k_nope, v = kv[..., :nope], kv[..., nope:]
    cos, sin = rope_cos_sin(S, rope, cfg["rope_theta"])
    cos_p = cos[position_ids][:, None]
    sin_p = sin[position_ids][:, None]
    q_pe = apply_rope(q_pe, cos_p, sin_p)
    k_pe = apply_rope(k_pe, cos_p, sin_p)
    qs = jnp.concatenate([q_nope, q_pe], axis=-1)
    ks = jnp.concatenate([k_nope, jnp.broadcast_to(k_pe, (B, H, S, rope))], axis=-1)
    w = jnp.einsum("bhqd,bhkd->bhqk", qs, ks) * (dq ** -0.5) + attention_mask
    w = jax.nn.softmax(w.astype(jnp.float32), axis=-1).astype(qs.dtype)
    o = jnp.einsum("bhqk,bhkd->bhqd", w, v)
    o = o.transpose(0, 2, 1, 3).reshape(B * S, H * dv) @ params["o_proj"]
    return o.reshape(B, S, Hdim)


# --------------------------------------------------------------------------
# Main
# --------------------------------------------------------------------------
if __name__ == "__main__":
    # Small MiniCPM3-style config (attention_bias=False, rope_scaling=None).
    cfg = dict(
        hidden_size=32,
        num_heads=2,
        q_lora_rank=16,
        kv_lora_rank=16,
        qk_nope_head_dim=16,
        qk_rope_head_dim=8,
        v_head_dim=16,          # hidden_size // num_heads
        rope_theta=10000.0,
        attn_block=8,           # small tile: exercises kv loop, causal skip, diag mask
    )
    q_head_dim = cfg["qk_nope_head_dim"] + cfg["qk_rope_head_dim"]   # 24

    key = jax.random.PRNGKey(0)
    keys = jax.random.split(key, 8)

    def w(k, shape, scale=0.05):
        return scale * jax.random.normal(k, shape, dtype=jnp.float32)

    # Weights stored already transposed: (in_features, out_features).
    # kv_a_proj_with_mqa is pre-split into its compressed-kv and rope columns.
    kv_a_full = w(keys[2], (cfg["hidden_size"],
                            cfg["kv_lora_rank"] + cfg["qk_rope_head_dim"]))
    params = {
        "q_a_proj": w(keys[0], (cfg["hidden_size"], cfg["q_lora_rank"])),
        "q_a_ln":   jnp.ones((cfg["q_lora_rank"],), jnp.float32),
        "q_b_proj": w(keys[1], (cfg["q_lora_rank"], cfg["num_heads"] * q_head_dim)),
        "kv_a_proj_c":  kv_a_full[:, :cfg["kv_lora_rank"]],
        "kv_a_proj_pe": kv_a_full[:, cfg["kv_lora_rank"]:],
        "kv_a_ln":  jnp.ones((cfg["kv_lora_rank"],), jnp.float32),
        "kv_b_proj": w(keys[3], (cfg["kv_lora_rank"],
                                 cfg["num_heads"] * (cfg["qk_nope_head_dim"] + cfg["v_head_dim"]))),
        "o_proj":   w(keys[4], (cfg["num_heads"] * cfg["v_head_dim"], cfg["hidden_size"])),
    }

    def check(B, S, data_key):
        hidden = jax.random.normal(data_key, (B, S, cfg["hidden_size"]), dtype=jnp.float32)
        pos = jnp.broadcast_to(jnp.arange(S, dtype=jnp.int32), (B, S))
        out = minicpm_attention_forward(params, hidden, pos, cfg)
        out = jax.block_until_ready(out)
        neg = jnp.finfo(jnp.float32).min
        causal = jnp.tril(jnp.ones((S, S), dtype=bool))
        mask = jnp.where(causal, 0.0, neg)[None, None, :, :]
        mask = jnp.broadcast_to(mask, (B, 1, S, S)).astype(jnp.float32)
        ref = reference_forward(params, hidden, mask, pos, cfg)
        assert out.shape == (B, S, cfg["hidden_size"])
        assert bool(jnp.all(jnp.isfinite(out)))
        assert bool(jnp.allclose(out, ref, rtol=1e-2, atol=1e-2)), \
            f"mismatch vs reference at B={B}, S={S}"
        return hidden, pos

    # fp32 run vs pure-JAX reference (divisible S).
    hidden_states, position_ids = check(2, 16, keys[5])
    # fp32 run with S not a multiple of the tile — exercises the padding path.
    check(2, 12, keys[6])

    # bf16 smoke run (native-dtype MXU operands, fp32 accumulation in-kernel).
    params_bf16 = jax.tree_util.tree_map(lambda a: a.astype(jnp.bfloat16), params)
    out_bf16 = minicpm_attention_forward(
        params_bf16, hidden_states.astype(jnp.bfloat16), position_ids, cfg)
    out_bf16 = jax.block_until_ready(out_bf16)
    assert out_bf16.dtype == jnp.bfloat16
    assert bool(jnp.all(jnp.isfinite(out_bf16.astype(jnp.float32))))

    print("KERNEL_OK")
</pallas_src>

<mosaic_0001>
module attributes {stable_mosaic.version = 11 : i64} {
  func.func @q_chain_kernel(%arg0: i32, %arg1: memref<32x32xf32, #tpu.memory_space<vmem>>, %arg2: memref<32x16xf32, #tpu.memory_space<vmem>>, %arg3: memref<1x16xf32, #tpu.memory_space<vmem>>, %arg4: memref<16x48xf32, #tpu.memory_space<vmem>>, %arg5: memref<32x48xf32, #tpu.memory_space<vmem>>) attributes {dimension_semantics = [#tpu.dimension_semantics<parallel>], iteration_bounds = array<i64: 1>, scalar_prefetch = 0 : i64, scratch_operands = 0 : i64, tpu.core_type = #tpu.core_type<tc>, window_params = [{transform_indices = @transform_0, window_bounds = array<i64: 32, 32>}, {pipeline_mode = #tpu.pipeline_mode<synchronous>, transform_indices = @transform_1, window_bounds = array<i64: 32, 16>}, {pipeline_mode = #tpu.pipeline_mode<synchronous>, transform_indices = @transform_2, window_bounds = array<i64: 1, 16>}, {pipeline_mode = #tpu.pipeline_mode<synchronous>, transform_indices = @transform_3, window_bounds = array<i64: 16, 48>}, {transform_indices = @transform_4, window_bounds = array<i64: 32, 48>}]} {
    %c0 = arith.constant 0 : index
    %c0_0 = arith.constant 0 : index
    %0 = vector.load %arg1[%c0, %c0_0] : memref<32x32xf32, #tpu.memory_space<vmem>>, vector<32x32xf32>
    %c0_1 = arith.constant 0 : index
    %c0_2 = arith.constant 0 : index
    %1 = vector.load %arg2[%c0_1, %c0_2] : memref<32x16xf32, #tpu.memory_space<vmem>>, vector<32x16xf32>
    %cst = arith.constant dense<0.000000e+00> : vector<32x16xf32>
    %2 = tpu.matmul %0, %1, %cst {dimension_numbers = #tpu.dot_dimension_numbers<[1], [0], [0], [1], [0, 0, 1, 1], [], []>} : vector<32x32xf32>, vector<32x16xf32>, vector<32x16xf32> -> vector<32x16xf32>
    %c0_3 = arith.constant 0 : index
    %c0_4 = arith.constant 0 : index
    %3 = vector.load %arg3[%c0_3, %c0_4] : memref<1x16xf32, #tpu.memory_space<vmem>>, vector<1x16xf32>
    %4 = arith.mulf %2, %2 : vector<32x16xf32>
    %cst_5 = arith.constant dense<0.000000e+00> : vector<32xf32>
    %5 = vector.multi_reduction <add>, %4, %cst_5 [1] : vector<32x16xf32> to vector<32xf32>
    %6 = vector.shape_cast %5 : vector<32xf32> to vector<32x1xf32>
    %cst_6 = arith.constant 1.600000e+01 : f32
    %7 = vector.broadcast %cst_6 : f32 to vector<32x1xf32>
    %8 = arith.divf %6, %7 : vector<32x1xf32>
    %cst_7 = arith.constant 9.99999997E-7 : f32
    %9 = vector.broadcast %cst_7 : f32 to vector<32x1xf32>
    %10 = arith.addf %8, %9 : vector<32x1xf32>
    %11 = math.rsqrt %10 : vector<32x1xf32>
    %12 = vector.broadcast %11 : vector<32x1xf32> to vector<32x16xf32>
    %13 = arith.mulf %2, %12 : vector<32x16xf32>
    %14 = vector.broadcast %3 : vector<1x16xf32> to vector<32x16xf32>
    %15 = arith.mulf %13, %14 : vector<32x16xf32>
    %c0_8 = arith.constant 0 : index
    %c0_9 = arith.constant 0 : index
    %16 = vector.load %arg4[%c0_8, %c0_9] : memref<16x48xf32, #tpu.memory_space<vmem>>, vector<16x48xf32>
    %cst_10 = arith.constant dense<0.000000e+00> : vector<32x48xf32>
    %17 = tpu.matmul %15, %16, %cst_10 {dimension_numbers = #tpu.dot_dimension_numbers<[1], [0], [0], [1], [0, 0, 1, 1], [], []>} : vector<32x16xf32>, vector<16x48xf32>, vector<32x48xf32> -> vector<32x48xf32>
    %c0_11 = arith.constant 0 : index
    %c0_12 = arith.constant 0 : index
    %18 = vector.load %arg5[%c0_11, %c0_12] : memref<32x48xf32, #tpu.memory_space<vmem>>, vector<32x48xf32>
    tpu.vector_store %arg5[%c0_11, %c0_12], %17 {strides = array<i32>} : memref<32x48xf32, #tpu.memory_space<vmem>>, vector<32x48xf32>,
    return
  }
  func.func @transform_0(%arg0: i32) -> (i32, i32) {
    %c0_i32 = arith.constant 0 : i32
    %c0_i32_0 = arith.constant 0 : i32
    return %arg0, %c0_i32 : i32, i32
  }
  func.func @transform_1(%arg0: i32) -> (i32, i32) {
    %c0_i32 = arith.constant 0 : i32
    %c0_i32_0 = arith.constant 0 : i32
    %c0_i32_1 = arith.constant 0 : i32
    return %c0_i32, %c0_i32_0 : i32, i32
  }
  func.func @transform_2(%arg0: i32) -> (i32, i32) {
    %c0_i32 = arith.constant 0 : i32
    %c0_i32_0 = arith.constant 0 : i32
    %c0_i32_1 = arith.constant 0 : i32
    return %c0_i32, %c0_i32_0 : i32, i32
  }
  func.func @transform_3(%arg0: i32) -> (i32, i32) {
    %c0_i32 = arith.constant 0 : i32
    %c0_i32_0 = arith.constant 0 : i32
    %c0_i32_1 = arith.constant 0 : i32
    return %c0_i32, %c0_i32_0 : i32, i32
  }
  func.func @transform_4(%arg0: i32) -> (i32, i32) {
    %c0_i32 = arith.constant 0 : i32
    %c0_i32_0 = arith.constant 0 : i32
    return %arg0, %c0_i32 : i32, i32
  }
}

</mosaic_0001>

<bundles_post_ra>
// kernel: tpu_custom_call.1
= control target key start
LH: loop header
LB: loop body
LE: loop exit
PB: predicated region body
PF: predicated region fallthrough
CT: control target
= control target key end

     0   :  { %vm26_vm0 = vcmask 261120   ;;  %s468_s0 = inlined_call_operand.vmem [shape: f32[32,32], index: 0, kind: input, shape index: {}]   ;;  %s469_s1 = inlined_call_operand.vmem [shape: f32[32,16], index: 1, kind: input, shape index: {}]   ;;  %s470_s2 = inlined_call_operand.vmem [shape: f32[1,16], index: 2, kind: input, shape index: {}]   ;;  %s471_s3 = inlined_call_operand.vmem [shape: f32[16,48], index: 3, kind: input, shape index: {}]   ;;  %s472_s4 = inlined_call_operand.hbm [shape: f32[32,48], index: 4, kind: output, shape index: {}]  }
   0x1   :  { %v22_v0 = vld [vmem:[%s469_s1] sm:$0xff]  ;;  %v23_v1 = vld [vmem:[%s469_s1 + $0x8] sm:$0xff]  ;;  %v24_v2 = vld [vmem:[%s469_s1 + $0x10] sm:$0xff] }
   0x2   :  { %v336_v3 = vpack.c.bf16 %v23_v1, %v22_v0  ;;  %v25_v4 = vld [vmem:[%s469_s1 + $0x18] sm:$0xff]  ;;  %v18_v5 = vld [vmem:[%s468_s0] sm:$0xff] }
   0x3   :  { %v340_v6 = vpack.c.bf16 %v25_v4, %v24_v2  ;;  %320 = vmatprep.mubr.msk.f32.mxu0 %vm26_vm0, %v18_v5 }
   0x4   :  { %9 = vsyncpa [#allocation3], 0  ;;  %337 = vmatprep.subr.bf16.mxu0 %v336_v3  ;;  %v19_v7 = vld [vmem:[%s468_s0 + $0x8] sm:$0xff]  ;;  %v20_v8 = vld [vmem:[%s468_s0 + $0x10] sm:$0xff]  ;;  %vm129_vm1 = vcmask 130048   ;;  %vm268_vm2 = vcmask 392192  }
   0x5   :  { %339 = vmatpush3.bf16.msra.mxu0 %v336_v3  ;;  %v21_v9 = vld [vmem:[%s468_s0 + $0x18] sm:$0xff]  ;;  %v169_v22 = vld [vmem:[%s471_s3] sm:$0xff]  ;;  %v170_v23 = vld [vmem:[%s471_s3 + $0x8] sm:$0xff] }
   0x6   :  { %341 = vmatprep.subr.bf16.mxu0 %v340_v6  ;;  %v344_v24 = vpack.c.bf16 %v170_v23, %v169_v22  ;;  %v293_v38 = vld [vmem:[%s470_s2] ss:$0 sm:$0xff]  ;;  %s383_s2 = smov [#allocation2]  }
   0x7   :  { %s278_s8 = sshll.u32 %s383_s2, 4  ;;  %s279_s8 = int_to_ptr.vmem [resolvable:$true] %s278_s8 }
   0x8   :  { %345 = vmatprep.subr.bf16.mxu1 %v344_v24  ;;  %s359_s9 = scalar_lea.vmem %s279_s8, 512  ;;  %p364_p1 = scmp.lt.s32.totalorder %s279_s8, %s279_s8 }
   0x9   :  { %343 = vmatpush3.bf16.msra.mxu0 %v340_v6  ;;  %347 = vmatpush3.bf16.msra.mxu1 %v344_v24  ;;  %p360_p0 = scmp.ne.s32.totalorder %s279_s8, %s359_s9  ;;  %p365_p2 = scmp.lt.s32.totalorder %s359_s9, %s359_s9 }
   0xb   :  { %p366_p3 = por %p365_p2, %p364_p1 }
   0xc   :  { %321 = vmatmul.mubr.msk.f32.vlgmr.msra.gmra.mrb[0].mxu0 %vm26_vm0, %v19_v7 }
   0xd   :  { %323 = vmatprep.mubr.msk.f32.mxu0 %vm26_vm0, %v20_v8  ;;  %p367_p4 = pnand %p366_p3, %p360_p0 }
  0x10   :  { %324 = vmatmul.mubr.msk.f32.gmra.mrb[2].mxu0 %vm26_vm0, %v21_v9 }
  0xdf   :  { %v322_v10 = vpop.f32.mrb[0].mxu0 }
  0xe0   :  { %v105_v11 = vpop.f32.mrb[1].mxu0  ;;  %v126_v13 = vmul.f32 %v322_v10, %v322_v10 }
  0xe1   :  { %v125_v12 = vmul.f32 %v105_v11, %v105_v11 }
  0xe2   :  { %v133_v19 = vsel %vm129_vm1, %v126_v13, 0.0 }
  0xe3   :  { %v325_v14 = vpop.f32.mrb[2].mxu0  ;;  %v130_v15 = vsel %vm129_vm1, %v125_v12, 0.0 }
  0xe4   :  { %131 = vadd.xlane.f32.xlu0 %v130_v15  ;;  %v115_v16 = vpop.f32.mrb[3].mxu0  ;;  %v128_v18 = vmul.f32 %v325_v14, %v325_v14 }
  0xe5   :  { %v127_v17 = vmul.f32 %v115_v16, %v115_v16 }
  0xe6   :  { %v139_v21 = vsel %vm129_vm1, %v128_v18, 0.0 }
  0xe7   :  { %v136_v20 = vsel %vm129_vm1, %v127_v17, 0.0 }
  0xe8   :  { %134 = vadd.xlane.f32.xlu0 %v133_v19  ;;  %137 = vadd.xlane.f32.xlu1 %v136_v20 }
  0xec   :  { %140 = vadd.xlane.f32.xlu1 %v139_v21 }
 0x171   :  { %v132_v25 = vpop.xlane.xlu0 %131 }
 0x172   :  { %v143_v26 = vmul.f32 0.0625, %v132_v25 }
 0x174   :  { %v147_v27 = vadd.f32 1e-06, %v143_v26 }
 0x175   :  { %v135_v28 = vpop.xlane.xlu0 %134  ;;  %v138_v29 = vpop.xlane.xlu1 %137 }
 0x176   :  { %351 = vrsqrt.f32 %v147_v27  ;;  %v144_v30 = vmul.f32 0.0625, %v135_v28  ;;  %v145_v31 = vmul.f32 0.0625, %v138_v29 }
 0x178   :  { %v148_v32 = vadd.f32 1e-06, %v144_v30  ;;  %v149_v33 = vadd.f32 1e-06, %v145_v31 }
 0x179   :  { %v141_v34 = vpop.xlane.xlu1 %140 }
 0x17a   :  { %353 = vrsqrt.f32 %v148_v32  ;;  %v146_v35 = vmul.f32 0.0625, %v141_v34 }
 0x17b   :  { %355 = vrsqrt.f32 %v149_v33 }
 0x17c   :  { %v150_v36 = vadd.f32 1e-06, %v146_v35 }
 0x17e   :  { %357 = vrsqrt.f32 %v150_v36 }
 0x180   :  { %v352_v37 = vpop.eup %351 }
 0x181   :  { %v155_v39 = vmul.f32 %v352_v37, %v105_v11 }
 0x183   :  { %v165_v40 = vmul.f32 %v293_v38, %v155_v39 }
 0x184   :  { %v354_v41 = vpop.eup %353 }
 0x185   :  { %v356_v42 = vpop.eup %355  ;;  %330 = vmatprep.mubr.msk.f32.mxu1 %vm129_vm1, %v165_v40  ;;  %v156_v43 = vmul.f32 %v354_v41, %v322_v10 }
 0x186   :  { %v157_v44 = vmul.f32 %v356_v42, %v115_v16 }
 0x187   :  { %v166_v45 = vmul.f32 %v293_v38, %v156_v43 }
 0x188   :  { %v358_v46 = vpop.eup %357  ;;  %v167_v47 = vmul.f32 %v293_v38, %v157_v44 }
 0x189   :  { %331 = vmatmul.mubr.msk.f32.vlgmr.msra.gmra.mrb[0].mxu1 %vm129_vm1, %v166_v45  ;;  %v158_v48 = vmul.f32 %v358_v46, %v325_v14 }
 0x18a   :  { %333 = vmatprep.mubr.msk.f32.mxu1 %vm129_vm1, %v167_v47 }
 0x18b   :  { %v168_v49 = vmul.f32 %v293_v38, %v158_v48 }
 0x18d   :  { %334 = vmatmul.mubr.msk.f32.gmra.mrb[2].mxu1 %vm129_vm1, %v168_v49 }
 0x25c   :  { %v332_v50 = vpop.f32.mrb[0].mxu1 }
 0x25d   :  { %270 = vst.msk [vmem:[#allocation2 + $0x8] sm:$0xff] %vm268_vm2, %v332_v50  ;;  %v249_v51 = vpop.f32.mrb[1].mxu1 }
 0x25e   :  { %269 = vst.msk [vmem:[#allocation2] sm:$0xff] %vm268_vm2, %v249_v51 }
 0x260   :  { %v335_v52 = vpop.f32.mrb[2].mxu1 }
 0x261   :  { %272 = vst.msk [vmem:[#allocation2 + $0x18] sm:$0xff] %vm268_vm2, %v335_v52  ;;  %v259_v53 = vpop.f32.mrb[3].mxu1 }
 0x262   :  { %271 = vst.msk [vmem:[#allocation2 + $0x10] sm:$0xff] %vm268_vm2, %v259_v53 }
 0x263   :  { %370 = shalt.err (!%p367_p4)
}
 0x264   :  { %s371_s12 = scalar_lea.hbm %s472_s4, 512 }
 0x265   :  { %p372_p5 = scmp.ne.s32.totalorder %s472_s4, %s371_s12  ;;  %p375_p6 = scmp.lt.u32.totalorder %s371_s12, %s472_s4 }
 0x267   :  { %p377_p7 = pnand %p375_p6, %p372_p5 }
 0x269   :  { %380 = shalt.err (!%p377_p7)
}
 0x26a   :  { %s384_s17 = smov 128   ;;  %s385_s18 = smov 8  }
 0x26b   :  { %284 = dma.vmem_to_hbm [thread:$0]  %s279_s8, 512, %s472_s4, [#allocation3], %s384_s17, %s384_s17, %s385_s18  }
 0x26c   :  { %381 = dma.done.wait [#allocation3], 512  }
 0x26d   :  { %382 = vsyncadd [#allocation3], 4294966784 }
 0x26e   :  { %288 = vsyncpa [#allocation3], 1 }

</bundles_post_ra>
